<compile_context>
chip_gen: v5e
topology: v5e:2x2
jax: 0.10.0
libtpu: 0.0.40
codegen_flags: <defaults>
</compile_context>

<pallas_src>
import functools

import jax
import jax.numpy as jnp
from jax import lax
from jax.experimental import pallas as pl
from jax.experimental.pallas import tpu as pltpu


def _mlp_kernel(x_ref, w1_ref, b1_ref, w2_ref, b2_ref, w3_ref, b3_ref,
                w4t_ref, b4_ref, o_ref):
    cd = w1_ref.dtype                        # bf16 (fast path) or f32 (exact path)
    x = x_ref[...].astype(cd)                # (TB, 11) natural layout

    # Layer 1: contract the in-dim (dim 1 of both operands) -> (64, TB).
    # Batch lands on the lane axis; all intermediates stay (features, TB).
    h = lax.dot_general(w1_ref[...], x, (((1,), (1,)), ((), ())),
                        preferred_element_type=jnp.float32)          # (64, TB)
    h = jnp.maximum(h + b1_ref[...], 0.0)

    # Layers 2 & 3: standard (out,in) @ (in,TB) on the MXU, f32 accumulation.
    h = lax.dot_general(w2_ref[...], h.astype(cd), (((1,), (0,)), ((), ())),
                        preferred_element_type=jnp.float32)          # (64, TB)
    h = jnp.maximum(h + b2_ref[...], 0.0)
    h = lax.dot_general(w3_ref[...], h.astype(cd), (((1,), (0,)), ((), ())),
                        preferred_element_type=jnp.float32)          # (16, TB)
    h = jnp.maximum(h + b3_ref[...], 0.0)

    # Layer 4: (2,16) @ (16,TB) computed on the VPU/XLU instead of a 4th MXU
    # pass group (result would occupy only 2 of 256 MXU rows).  w4 is passed
    # pre-transposed as (16, 2) so each output row is a lane-broadcast column.
    w4t = w4t_ref[...]                                               # (16, 2) f32
    o0 = jnp.sum(h * w4t[:, 0:1], axis=0, keepdims=True)             # (1, TB)
    o1 = jnp.sum(h * w4t[:, 1:2], axis=0, keepdims=True)             # (1, TB)
    o = jnp.concatenate([o0, o1], axis=0) + b4_ref[...]              # (2, TB)
    o_ref[...] = o.astype(o_ref.dtype)


def _const_spec(shape):
    # Same block for every grid step -> loaded once, VMEM-resident weights.
    return pl.BlockSpec(shape, lambda i: (0, 0))


def _choose_tile(batch, max_tb):
    """Batch tile: big (amortize per-step cost), multiple of 128 (lane-dense
    output), and >= 2 grid steps whenever possible (v7x has 2 TensorCores)."""
    if batch <= 128:
        return batch                      # single full block; exempt from (8,128)
    half = -(-batch // 2)
    tb = -(-half // 128) * 128            # round up to a multiple of 128
    return max(128, min(tb, max_tb))


@functools.partial(jax.jit, static_argnames=("max_tb", "use_bf16"))
def mlp_forward(x, w1, b1, w2, b2, w3, b3, w4, b4, *, max_tb=4096, use_bf16=True):
    """x: (B, ...) with prod(...) == 11 (the `image.view(B, -1)`).
    w*: PyTorch nn.Linear layout (out_features, in_features); b*: (out_features,).
    Returns (B, 2) f32."""
    B = x.shape[0]
    x2 = x.reshape(B, -1).astype(jnp.float32)        # .view(B, -1); no transpose/pad
    tb = _choose_tile(B, max_tb)
    grid = (pl.cdiv(B, tb),)

    wdt = jnp.bfloat16 if use_bf16 else jnp.float32
    w1c, w2c, w3c = (w.astype(wdt) for w in (w1, w2, w3))
    # Biases as (H,1) columns -> broadcast over the lane (batch) axis; keep f32.
    b1c, b2c, b3c, b4c = (b.reshape(-1, 1).astype(jnp.float32)
                          for b in (b1, b2, b3, b4))
    w4t = w4.T.astype(jnp.float32)                   # (16, 2), VPU layer stays f32

    out_t = pl.pallas_call(
        _mlp_kernel,
        out_shape=jax.ShapeDtypeStruct((2, B), jnp.float32),
        grid_spec=pltpu.PrefetchScalarGridSpec(
            num_scalar_prefetch=0,
            grid=grid,
            in_specs=[
                pl.BlockSpec((tb, 11), lambda i: (i, 0)),   # x tile, natural layout
                _const_spec((64, 11)), _const_spec((64, 1)),
                _const_spec((64, 64)), _const_spec((64, 1)),
                _const_spec((16, 64)), _const_spec((16, 1)),
                _const_spec((16, 2)),  _const_spec((2, 1)),
            ],
            out_specs=pl.BlockSpec((2, tb), lambda i: (0, i)),  # lane-dense output
        ),
        compiler_params=pltpu.CompilerParams(
            dimension_semantics=("parallel",),
            vmem_limit_bytes=32 * 1024 * 1024,
        ),
    )(x2, w1c, b1c, w2c, b2c, w3c, b3c, w4t, b4c)

    return out_t.T                                   # cheap (2,B)->(B,2) transpose


def _reference(x, w1, b1, w2, b2, w3, b3, w4, b4):
    h = x.reshape(x.shape[0], -1)
    h = jnp.maximum(h @ w1.T + b1, 0.0)
    h = jnp.maximum(h @ w2.T + b2, 0.0)
    h = jnp.maximum(h @ w3.T + b3, 0.0)
    return h @ w4.T + b4


if __name__ == "__main__":
    key = jax.random.PRNGKey(0)
    keys = jax.random.split(key, 9)
    batch = 200                     # not a multiple of the tile -> masked tail block

    x = jax.random.normal(keys[0], (batch, 11), dtype=jnp.float32)
    w1 = jax.random.normal(keys[1], (64, 11), dtype=jnp.float32) * 0.1
    b1 = jax.random.normal(keys[2], (64,), dtype=jnp.float32) * 0.1
    w2 = jax.random.normal(keys[3], (64, 64), dtype=jnp.float32) * 0.1
    b2 = jax.random.normal(keys[4], (64,), dtype=jnp.float32) * 0.1
    w3 = jax.random.normal(keys[5], (16, 64), dtype=jnp.float32) * 0.1
    b3 = jax.random.normal(keys[6], (16,), dtype=jnp.float32) * 0.1
    w4 = jax.random.normal(keys[7], (2, 16), dtype=jnp.float32) * 0.1
    b4 = jax.random.normal(keys[8], (2,), dtype=jnp.float32) * 0.1

    ref = _reference(x, w1, b1, w2, b2, w3, b3, w4, b4)

    # Exact path (f32 MXU) — tight tolerance.
    out_f32 = mlp_forward(x, w1, b1, w2, b2, w3, b3, w4, b4, use_bf16=False)
    out_f32 = jax.block_until_ready(out_f32)
    assert out_f32.shape == (batch, 2), out_f32.shape
    err_f32 = float(jnp.max(jnp.abs(out_f32 - ref)))
    assert jnp.allclose(out_f32, ref, atol=1e-4, rtol=1e-4), err_f32

    # Fast path (bf16 operands, f32 accumulation) — relaxed tolerance.
    out_bf16 = mlp_forward(x, w1, b1, w2, b2, w3, b3, w4, b4, use_bf16=True)
    out_bf16 = jax.block_until_ready(out_bf16)
    assert out_bf16.shape == (batch, 2), out_bf16.shape
    err_bf16 = float(jnp.max(jnp.abs(out_bf16 - ref)))
    assert jnp.allclose(out_bf16, ref, atol=5e-2, rtol=5e-2), err_bf16

    print("KERNEL_OK")
</pallas_src>

<mosaic_0001>
module attributes {stable_mosaic.version = 11 : i64} {
  func.func @_mlp_kernel(%arg0: i32, %arg1: memref<128x11xf32, #tpu.memory_space<vmem>>, %arg2: memref<64x11xf32, #tpu.memory_space<vmem>>, %arg3: memref<64x1xf32, #tpu.memory_space<vmem>>, %arg4: memref<64x64xf32, #tpu.memory_space<vmem>>, %arg5: memref<64x1xf32, #tpu.memory_space<vmem>>, %arg6: memref<16x64xf32, #tpu.memory_space<vmem>>, %arg7: memref<16x1xf32, #tpu.memory_space<vmem>>, %arg8: memref<16x2xf32, #tpu.memory_space<vmem>>, %arg9: memref<2x1xf32, #tpu.memory_space<vmem>>, %arg10: memref<2x128xf32, #tpu.memory_space<vmem>>) attributes {dimension_semantics = [#tpu.dimension_semantics<parallel>], iteration_bounds = array<i64: 2>, scalar_prefetch = 0 : i64, scratch_operands = 0 : i64, tpu.core_type = #tpu.core_type<tc>, window_params = [{transform_indices = @transform_0, window_bounds = array<i64: 128, 11>}, {pipeline_mode = #tpu.pipeline_mode<synchronous>, transform_indices = @transform_1, window_bounds = array<i64: 64, 11>}, {pipeline_mode = #tpu.pipeline_mode<synchronous>, transform_indices = @transform_2, window_bounds = array<i64: 64, 1>}, {pipeline_mode = #tpu.pipeline_mode<synchronous>, transform_indices = @transform_3, window_bounds = array<i64: 64, 64>}, {pipeline_mode = #tpu.pipeline_mode<synchronous>, transform_indices = @transform_4, window_bounds = array<i64: 64, 1>}, {pipeline_mode = #tpu.pipeline_mode<synchronous>, transform_indices = @transform_5, window_bounds = array<i64: 16, 64>}, {pipeline_mode = #tpu.pipeline_mode<synchronous>, transform_indices = @transform_6, window_bounds = array<i64: 16, 1>}, {pipeline_mode = #tpu.pipeline_mode<synchronous>, transform_indices = @transform_7, window_bounds = array<i64: 16, 2>}, {pipeline_mode = #tpu.pipeline_mode<synchronous>, transform_indices = @transform_8, window_bounds = array<i64: 2, 1>}, {transform_indices = @transform_9, window_bounds = array<i64: 2, 128>}]} {
    %c0 = arith.constant 0 : index
    %c0_0 = arith.constant 0 : index
    %0 = vector.load %arg1[%c0, %c0_0] : memref<128x11xf32, #tpu.memory_space<vmem>>, vector<128x11xf32>
    %c0_1 = arith.constant 0 : index
    %c0_2 = arith.constant 0 : index
    %1 = vector.load %arg2[%c0_1, %c0_2] : memref<64x11xf32, #tpu.memory_space<vmem>>, vector<64x11xf32>
    %cst = arith.constant dense<0.000000e+00> : vector<64x128xf32>
    %2 = tpu.matmul %1, %0, %cst {dimension_numbers = #tpu.dot_dimension_numbers<[1], [1], [0], [0], [0, 0, 1, 0], [], []>} : vector<64x11xf32>, vector<128x11xf32>, vector<64x128xf32> -> vector<64x128xf32>
    %c0_3 = arith.constant 0 : index
    %c0_4 = arith.constant 0 : index
    %3 = vector.load %arg3[%c0_3, %c0_4] : memref<64x1xf32, #tpu.memory_space<vmem>>, vector<64x1xf32>
    %4 = vector.broadcast %3 : vector<64x1xf32> to vector<64x128xf32>
    %5 = arith.addf %2, %4 : vector<64x128xf32>
    %cst_5 = arith.constant 0.000000e+00 : f32
    %6 = vector.broadcast %cst_5 : f32 to vector<64x128xf32>
    %7 = arith.maximumf %5, %6 : vector<64x128xf32>
    %c0_6 = arith.constant 0 : index
    %c0_7 = arith.constant 0 : index
    %8 = vector.load %arg4[%c0_6, %c0_7] : memref<64x64xf32, #tpu.memory_space<vmem>>, vector<64x64xf32>
    %cst_8 = arith.constant dense<0.000000e+00> : vector<64x128xf32>
    %9 = tpu.matmul %8, %7, %cst_8 {dimension_numbers = #tpu.dot_dimension_numbers<[1], [0], [0], [1], [0, 0, 1, 1], [], []>} : vector<64x64xf32>, vector<64x128xf32>, vector<64x128xf32> -> vector<64x128xf32>
    %c0_9 = arith.constant 0 : index
    %c0_10 = arith.constant 0 : index
    %10 = vector.load %arg5[%c0_9, %c0_10] : memref<64x1xf32, #tpu.memory_space<vmem>>, vector<64x1xf32>
    %11 = vector.broadcast %10 : vector<64x1xf32> to vector<64x128xf32>
    %12 = arith.addf %9, %11 : vector<64x128xf32>
    %cst_11 = arith.constant 0.000000e+00 : f32
    %13 = vector.broadcast %cst_11 : f32 to vector<64x128xf32>
    %14 = arith.maximumf %12, %13 : vector<64x128xf32>
    %c0_12 = arith.constant 0 : index
    %c0_13 = arith.constant 0 : index
    %15 = vector.load %arg6[%c0_12, %c0_13] : memref<16x64xf32, #tpu.memory_space<vmem>>, vector<16x64xf32>
    %cst_14 = arith.constant dense<0.000000e+00> : vector<16x128xf32>
    %16 = tpu.matmul %15, %14, %cst_14 {dimension_numbers = #tpu.dot_dimension_numbers<[1], [0], [0], [1], [0, 0, 1, 1], [], []>} : vector<16x64xf32>, vector<64x128xf32>, vector<16x128xf32> -> vector<16x128xf32>
    %c0_15 = arith.constant 0 : index
    %c0_16 = arith.constant 0 : index
    %17 = vector.load %arg7[%c0_15, %c0_16] : memref<16x1xf32, #tpu.memory_space<vmem>>, vector<16x1xf32>
    %18 = vector.broadcast %17 : vector<16x1xf32> to vector<16x128xf32>
    %19 = arith.addf %16, %18 : vector<16x128xf32>
    %cst_17 = arith.constant 0.000000e+00 : f32
    %20 = vector.broadcast %cst_17 : f32 to vector<16x128xf32>
    %21 = arith.maximumf %19, %20 : vector<16x128xf32>
    %c0_18 = arith.constant 0 : index
    %c0_19 = arith.constant 0 : index
    %22 = vector.load %arg8[%c0_18, %c0_19] : memref<16x2xf32, #tpu.memory_space<vmem>>, vector<16x2xf32>
    %23 = vector.extract_strided_slice %22 {offsets = [0, 0], sizes = [16, 1], strides = [1, 1]} : vector<16x2xf32> to vector<16x1xf32>
    %24 = vector.broadcast %23 : vector<16x1xf32> to vector<16x128xf32>
    %25 = arith.mulf %21, %24 : vector<16x128xf32>
    %cst_20 = arith.constant dense<0.000000e+00> : vector<128xf32>
    %26 = vector.multi_reduction <add>, %25, %cst_20 [0] : vector<16x128xf32> to vector<128xf32>
    %27 = vector.shape_cast %26 : vector<128xf32> to vector<1x128xf32>
    %28 = vector.extract_strided_slice %22 {offsets = [0, 1], sizes = [16, 1], strides = [1, 1]} : vector<16x2xf32> to vector<16x1xf32>
    %29 = vector.broadcast %28 : vector<16x1xf32> to vector<16x128xf32>
    %30 = arith.mulf %21, %29 : vector<16x128xf32>
    %cst_21 = arith.constant dense<0.000000e+00> : vector<128xf32>
    %31 = vector.multi_reduction <add>, %30, %cst_21 [0] : vector<16x128xf32> to vector<128xf32>
    %32 = vector.shape_cast %31 : vector<128xf32> to vector<1x128xf32>
    %33 = tpu.concatenate %27, %32 in 0 : vector<1x128xf32>, vector<1x128xf32> -> vector<2x128xf32>
    %c0_22 = arith.constant 0 : index
    %c0_23 = arith.constant 0 : index
    %34 = vector.load %arg9[%c0_22, %c0_23] : memref<2x1xf32, #tpu.memory_space<vmem>>, vector<2x1xf32>
    %35 = vector.broadcast %34 : vector<2x1xf32> to vector<2x128xf32>
    %36 = arith.addf %33, %35 : vector<2x128xf32>
    %c0_24 = arith.constant 0 : index
    %c0_25 = arith.constant 0 : index
    %37 = vector.load %arg10[%c0_24, %c0_25] : memref<2x128xf32, #tpu.memory_space<vmem>>, vector<2x128xf32>
    tpu.vector_store %arg10[%c0_24, %c0_25], %36 {strides = array<i32>} : memref<2x128xf32, #tpu.memory_space<vmem>>, vector<2x128xf32>,
    return
  }
  func.func @transform_0(%arg0: i32) -> (i32, i32) {
    %c0_i32 = arith.constant 0 : i32
    %c0_i32_0 = arith.constant 0 : i32
    return %arg0, %c0_i32 : i32, i32
  }
  func.func @transform_1(%arg0: i32) -> (i32, i32) {
    %c0_i32 = arith.constant 0 : i32
    %c0_i32_0 = arith.constant 0 : i32
    %c0_i32_1 = arith.constant 0 : i32
    return %c0_i32, %c0_i32_0 : i32, i32
  }
  func.func @transform_2(%arg0: i32) -> (i32, i32) {
    %c0_i32 = arith.constant 0 : i32
    %c0_i32_0 = arith.constant 0 : i32
    %c0_i32_1 = arith.constant 0 : i32
    return %c0_i32, %c0_i32_0 : i32, i32
  }
  func.func @transform_3(%arg0: i32) -> (i32, i32) {
    %c0_i32 = arith.constant 0 : i32
    %c0_i32_0 = arith.constant 0 : i32
    %c0_i32_1 = arith.constant 0 : i32
    return %c0_i32, %c0_i32_0 : i32, i32
  }
  func.func @transform_4(%arg0: i32) -> (i32, i32) {
    %c0_i32 = arith.constant 0 : i32
    %c0_i32_0 = arith.constant 0 : i32
    %c0_i32_1 = arith.constant 0 : i32
    return %c0_i32, %c0_i32_0 : i32, i32
  }
  func.func @transform_5(%arg0: i32) -> (i32, i32) {
    %c0_i32 = arith.constant 0 : i32
    %c0_i32_0 = arith.constant 0 : i32
    %c0_i32_1 = arith.constant 0 : i32
    return %c0_i32, %c0_i32_0 : i32, i32
  }
  func.func @transform_6(%arg0: i32) -> (i32, i32) {
    %c0_i32 = arith.constant 0 : i32
    %c0_i32_0 = arith.constant 0 : i32
    %c0_i32_1 = arith.constant 0 : i32
    return %c0_i32, %c0_i32_0 : i32, i32
  }
  func.func @transform_7(%arg0: i32) -> (i32, i32) {
    %c0_i32 = arith.constant 0 : i32
    %c0_i32_0 = arith.constant 0 : i32
    %c0_i32_1 = arith.constant 0 : i32
    return %c0_i32, %c0_i32_0 : i32, i32
  }
  func.func @transform_8(%arg0: i32) -> (i32, i32) {
    %c0_i32 = arith.constant 0 : i32
    %c0_i32_0 = arith.constant 0 : i32
    %c0_i32_1 = arith.constant 0 : i32
    return %c0_i32, %c0_i32_0 : i32, i32
  }
  func.func @transform_9(%arg0: i32) -> (i32, i32) {
    %c0_i32 = arith.constant 0 : i32
    %c0_i32_0 = arith.constant 0 : i32
    return %c0_i32, %arg0 : i32, i32
  }
}

</mosaic_0001>

<bundles_post_ra>
// kernel: mlp_forward.1
= control target key start
LH: loop header
LB: loop body
LE: loop exit
PB: predicated region body
PF: predicated region fallthrough
CT: control target
= control target key end

     0   :  { %14 = vsyncpa [#allocation3], 0  ;;  %s1390_s0 = inlined_call_operand.vmem [shape: f32[200,11], index: 0, kind: input, shape index: {}]   ;;  %s1391_s1 = inlined_call_operand.vmem [shape: f32[64,11], index: 1, kind: input, shape index: {}]   ;;  %s1392_s2 = inlined_call_operand.vmem [shape: f32[64,1], index: 2, kind: input, shape index: {}]   ;;  %s1393_s3 = inlined_call_operand.vmem [shape: f32[64,64], index: 3, kind: input, shape index: {}]   ;;  %s1394_s4 = inlined_call_operand.vmem [shape: f32[64,1], index: 4, kind: input, shape index: {}]   ;;  %s1395_s5 = inlined_call_operand.vmem [shape: f32[16,64], index: 5, kind: input, shape index: {}]   ;;  %s1396_s6 = inlined_call_operand.vmem [shape: f32[16,1], index: 6, kind: input, shape index: {}]   ;;  %s1397_s7 = inlined_call_operand.vmem [shape: f32[16,2], index: 7, kind: input, shape index: {}]   ;;  %s1398_s8 = inlined_call_operand.vmem [shape: f32[2,1], index: 8, kind: input, shape index: {}]   ;;  %s1399_s9 = inlined_call_operand.hbm [shape: f32[2,200], index: 9, kind: output, shape index: {}]  }
   0x1   :  { %16 = vsyncpa [#allocation3 + $0x1], 0  ;;  %s1093_s30 = smov 0   ;;  %s1095_s10 = smov 0  }
   0x2   :  { %s1097_s11 = smov 0   ;;  %s1099_s12 = smov 0  }
   0x3 LB: > { %s1114_s13 = sadd.s32 4294967295, %s1039_s12   ;;  %s845_s14 = sadd.s32 4294967294, %s1039_s12   ;;  %s1039_s12 = sphi %s1099_s12, %s1405_s12   ;;  %s1035_s11 = sphi %s1097_s11, %s1404_s11   ;;  %s1031_s10 = sphi %s1095_s10, %s1403_s10   ;;  %s1027_s30 = sphi %s1093_s30, %s1402_s30  }
   0x4   : > { %s1118_s15 = sadd.s32 1, %s1039_s12   ;;  %s223_s16 = sadd.s32 1, %s1035_s11 }
   0x5   : > { %s220_s17 = ssub.s32 %s1039_s12, %s1118_s15  ;;  %p233_p0 = scmp.ne.s32.totalorder %s1035_s11, %s1031_s10 }
   0x6   : > { %p221_p1 = scmp.eq.s32.totalorder %s220_s17, 0  ;;  %p234_p2 = scmp.eq.s32.totalorder %s1114_s13, 1 }
   0x7   : > { %p239_p3 = scmp.ne.s32.totalorder %s1031_s10, %s1027_s30  ;;  %p240_p4 = scmp.eq.s32.totalorder %s845_s14, 1 }
   0x8   : > { %s1129_s18 = scalar_select %p221_p1, %s1035_s11, %s223_s16  }
   0x9   : > { %p1131_p5 = por %p234_p2, %p233_p0  ;;  %p1135_p6 = por %p240_p4, %p239_p3 }
   0xa   : > { %p848_p7 = scmp.ge.s32.totalorder %s1039_s12, 1  ;;  %p299_p8 = scmp.lt.s32.totalorder %s1039_s12, 3 }
   0xc   : > { %p300_p9 = pnand %p848_p7, %p299_p8 }
   0xd   : > { %s850_s21 = sshll.u32 (!%p300_p9), %s1114_s13, 4  ;;  %s887_s24 = sshll.u32 (!%p300_p9), %s1114_s13, 1 }
   0xe   : > { %303 = sbr.rel (%p300_p9) target bundleno = 612 (0x264), region = 56  ;;  %p344_p10 = scmp.lt.s32.totalorder (!%p300_p9), %s850_s21, 24 }
   0xf   : > { %s781_s28 = scalar_lea.hbm (!%p300_p9), %s1399_s9, %s887_s24 }
  0x13   : > { %s1407_s21 = smov (!%p344_p10, %s850_s21), 24  ;;  %vm425_vm0 = vcmask 89088   ;;  %v382_v2 = vld [vmem:[%s1392_s2 + $0x28] sm:$0xff]  ;;  %v1041_v4 = vmov 0   ;;  %v384_v5 = vld [vmem:[%s1392_s2 + $0x38] sm:$0xff]  ;;  %v381_v7 = vld [vmem:[%s1392_s2 + $0x20] sm:$0xff] }
  0x14   : > { %s851_s22 = sshll.u32 %s1407_s21, 3  ;;  %972 = vset.pattern.permute.xlu1 %v1041_v4  ;;  %971 = vset.pattern.permute.xlu0 %v1041_v4  ;;  %v383_v9 = vld [vmem:[%s1392_s2 + $0x30] sm:$0xff]  ;;  %v377_v11 = vld [vmem:[%s1392_s2] sm:$0xff]  ;;  %v378_v13 = vld [vmem:[%s1392_s2 + $0x8] sm:$0xff]  ;;  %vm603_vm1 = vcmask 523264   ;;  %vm760_vm2 = vcmask 1040384  }
  0x15   : > { %s1145_s25 = scalar_lea.vmem %s1390_s0, %s851_s22  ;;  %412 = vperm.xlu1 %972, %v382_v2   ;;  %973 = vset.pattern.permute.xlu2 %v1041_v4  ;;  %v560_v15 = vld [vmem:[%s1394_s4 + $0x28] sm:$0xff]  ;;  %v561_v17 = vld [vmem:[%s1394_s4 + $0x30] sm:$0xff]  ;;  %v558_v21 = vld [vmem:[%s1394_s4 + $0x18] sm:$0xff]  ;;  %s336_s22 = sand.u32 1, %s1031_s10  }
  0x16   : > { %v368_v0 = vld [vmem:[%s1145_s25 + $0x78] sm:$0xff]  ;;  %v367_v1 = vld [vmem:[%s1145_s25 + $0x70] sm:$0xff]  ;;  %v366_v3 = vld [vmem:[%s1145_s25 + $0x68] sm:$0xff]  ;;  %422 = vperm.xlu0 %971, %v384_v5   ;;  %s849_s23 = sshll.u32 %s336_s22, 1  ;;  %s771_s13 = scalar_lea.sflag [#allocation3], %s336_s22 }
  0x17   : > { %891 = vmatpush.xpose.msk.msra.mxu3 %vm425_vm0, %v368_v0  ;;  %890 = vmatpush.xpose.msk.msra.mxu2 %vm425_vm0, %v368_v0  ;;  %v365_v6 = vld [vmem:[%s1145_s25 + $0x60] sm:$0xff]  ;;  %v364_v8 = vld [vmem:[%s1145_s25 + $0x58] sm:$0xff]  ;;  %v363_v10 = vld [vmem:[%s1145_s25 + $0x50] sm:$0xff]  ;;  %s338_s29 = scalar_lea.vmem [#allocation2], %s849_s23  ;;  %s997_s23 = scalar_lea.hbm %s1399_s9, 4 }
  0x18   : > { %852 = vmatpush.xpose.msk.msra.mxu0 %vm425_vm0, %v368_v0  ;;  %v362_v12 = vld [vmem:[%s1145_s25 + $0x48] sm:$0xff]  ;;  %v361_v14 = vld [vmem:[%s1145_s25 + $0x40] sm:$0xff]  ;;  %v360_v16 = vld [vmem:[%s1145_s25 + $0x38] sm:$0xff]  ;;  %s783_s14 = sshll.u32 %s338_s29, 4  ;;  %s784_s14 = int_to_ptr.vmem [resolvable:$true] %s783_s14 }
  0x19   : > { %v359_v18 = vld [vmem:[%s1145_s25 + $0x30] sm:$0xff]  ;;  %v358_v20 = vld [vmem:[%s1145_s25 + $0x28] sm:$0xff]  ;;  %v357_v22 = vld [vmem:[%s1145_s25 + $0x20] sm:$0xff] }
  0x1a   : > { %v557_v19 = vld [vmem:[%s1394_s4 + $0x10] sm:$0xff]  ;;  %v679_v23 = vld [vmem:[%s1396_s6] sm:$0xff]  ;;  %v356_v24 = vld [vmem:[%s1145_s25 + $0x18] sm:$0xff] }
  0x1b   : > { %893 = vmatpush.xpose.msk.msra.mxu3 %vm425_vm0, %v367_v1  ;;  %892 = vmatpush.xpose.msk.msra.mxu2 %vm425_vm0, %v367_v1  ;;  %v380_v25 = vld [vmem:[%s1392_s2 + $0x18] sm:$0xff]  ;;  %v555_v26 = vld [vmem:[%s1394_s4] sm:$0xff]  ;;  %v355_v27 = vld [vmem:[%s1145_s25 + $0x10] sm:$0xff] }
  0x1c   : > { %853 = vmatpush.xpose.msk.msra.mxu0 %vm425_vm0, %v367_v1  ;;  %402 = vperm.xlu2 %973, %v380_v25   ;;  %v1245_v28 = vld [vmem:[%s1397_s7 + $0x8] sm:$0xff]  ;;  %v379_v30 = vld [vmem:[%s1392_s2 + $0x10] sm:$0xff]  ;;  %v1258_v31 = vld [vmem:[%s1397_s7] sm:$0xff] }
  0x1d   : > { %407 = vperm.xlu1 %972, %v381_v7   ;;  %v354_v29 = vld [vmem:[%s1145_s25 + $0x8] sm:$0xff]  ;;  %v353_v32 = vld [vmem:[%s1145_s25] sm:$0xff]  ;;  %v372_v35 = vld [vmem:[%s1391_s1 + $0x18] sm:$0xff]  ;;  %s785_s25 = sshll.u32 %s781_s28, 4  ;;  %s786_s25 = int_to_ptr.hbm [resolvable:$true] %s785_s25 }
  0x1e   : > { %417 = vperm.xlu0 %971, %v383_v9   ;;  %v762_v33 = vld [vmem:[%s1398_s8] sm:$0x3]  ;;  %v374_v34 = vld [vmem:[%s1391_s1 + $0x28] sm:$0xff]  ;;  %v562_v37 = vld [vmem:[%s1394_s4 + $0x38] sm:$0xff]  ;;  %s991_s16 = sshra.s32 %s786_s25, 4  ;;  %s992_s16 = int_to_ptr.hbm [resolvable:$true] %s991_s16 }
  0x1f   : > { %895 = vmatpush.xpose.msk.msra.mxu3 %vm425_vm0, %v366_v3  ;;  %894 = vmatpush.xpose.msk.msra.mxu2 %vm425_vm0, %v366_v3  ;;  %v369_v36 = vld [vmem:[%s1391_s1] sm:$0xff]  ;;  %v375_v38 = vld [vmem:[%s1391_s1 + $0x30] sm:$0xff]  ;;  %v370_v40 = vld [vmem:[%s1391_s1 + $0x8] sm:$0xff]  ;;  %s993_s17 = scalar_lea.hbm %s992_s16, 2  ;;  %p998_p0 = scmp.lt.s32.totalorder %s992_s16, %s1399_s9 }
  0x20   : > { %854 = vmatpush.xpose.msk.msra.mxu0 %vm425_vm0, %v366_v3  ;;  %v373_v39 = vld [vmem:[%s1391_s1 + $0x20] sm:$0xff]  ;;  %v376_v42 = vld [vmem:[%s1391_s1 + $0x38] sm:$0xff]  ;;  %v371_v43 = vld [vmem:[%s1391_s1 + $0x10] sm:$0xff]  ;;  %p994_p11 = scmp.ne.s32.totalorder %s992_s16, %s993_s17  ;;  %p999_p1 = scmp.lt.s32.totalorder %s997_s23, %s993_s17 }
  0x21   : > { %v559_v41 = vld [vmem:[%s1394_s4 + $0x20] sm:$0xff]  ;;  %v556_v44 = vld [vmem:[%s1394_s4 + $0x8] sm:$0xff] }
  0x22   : > { %v680_v45 = vld [vmem:[%s1396_s6 + $0x8] sm:$0xff]  ;;  %p995_p12 = pnand %p994_p11, %p1131_p5  ;;  %p1000_p2 = por %p999_p1, %p998_p0 }
  0x23   : > { %897 = vmatpush.xpose.msk.msra.mxu3 %vm425_vm0, %v365_v6  ;;  %896 = vmatpush.xpose.msk.msra.mxu2 %vm425_vm0, %v365_v6 }
  0x24   : > { %855 = vmatpush.xpose.msk.msra.mxu0 %vm425_vm0, %v365_v6  ;;  %397 = vperm.xlu2 %973, %v379_v30   ;;  %v1042_v30 = vmov 1   ;;  %p996_p13 = pneg %p995_p12 }
  0x25   : > { %387 = vperm.xlu1 %972, %v377_v11  }
  0x26   : > { %392 = vperm.xlu0 %971, %v378_v13   ;;  %p1001_p3 = pnand %p1000_p2, %p996_p13 }
  0x27   : > { %899 = vmatpush.xpose.msk.msra.mxu3 %vm425_vm0, %v364_v8  ;;  %898 = vmatpush.xpose.msk.msra.mxu2 %vm425_vm0, %v364_v8 }
  0x28   : > { %856 = vmatpush.xpose.msk.msra.mxu0 %vm425_vm0, %v364_v8 }
  0x2b   : > { %901 = vmatpush.xpose.msk.msra.mxu3 %vm425_vm0, %v363_v10  ;;  %900 = vmatpush.xpose.msk.msra.mxu2 %vm425_vm0, %v363_v10 }
  0x2c   : > { %857 = vmatpush.xpose.msk.msra.mxu0 %vm425_vm0, %v363_v10  ;;  %600 = vperm.xlu2 %973, %v562_v37  }
  0x2d   : > { %590 = vperm.xlu1 %972, %v560_v15   ;;  %v547_v15 = vld [vmem:[%s1393_s3] sm:$0xff] }
  0x2e   : > { %595 = vperm.xlu0 %971, %v561_v17   ;;  %v549_v17 = vld [vmem:[%s1393_s3 + $0x10] sm:$0xff] }
  0x2f   : > { %903 = vmatpush.xpose.msk.msra.mxu3 %vm425_vm0, %v362_v12  ;;  %902 = vmatpush.xpose.msk.msra.mxu2 %vm425_vm0, %v362_v12 }
  0x30   : > { %858 = vmatpush.xpose.msk.msra.mxu0 %vm425_vm0, %v362_v12 }
  0x33   : > { %905 = vmatpush.xpose.msk.msra.mxu3 %vm425_vm0, %v361_v14  ;;  %904 = vmatpush.xpose.msk.msra.mxu2 %vm425_vm0, %v361_v14 }
  0x34   : > { %859 = vmatpush.xpose.msk.msra.mxu0 %vm425_vm0, %v361_v14  ;;  %585 = vperm.xlu2 %973, %v559_v41  }
  0x35   : > { %575 = vperm.xlu1 %972, %v557_v19   ;;  %v551_v19 = vld [vmem:[%s1393_s3 + $0x20] sm:$0xff] }
  0x36   : > { %580 = vperm.xlu0 %971, %v558_v21   ;;  %v553_v21 = vld [vmem:[%s1393_s3 + $0x30] sm:$0xff] }
  0x37   : > { %907 = vmatpush.xpose.msk.msra.mxu3 %vm425_vm0, %v360_v16  ;;  %906 = vmatpush.xpose.msk.msra.mxu2 %vm425_vm0, %v360_v16 }
  0x38   : > { %860 = vmatpush.xpose.msk.msra.mxu0 %vm425_vm0, %v360_v16  ;;  %v548_v16 = vld [vmem:[%s1393_s3 + $0x8] sm:$0xff] }
  0x3b   : > { %909 = vmatpush.xpose.msk.msra.mxu3 %vm425_vm0, %v359_v18  ;;  %908 = vmatpush.xpose.msk.msra.mxu2 %vm425_vm0, %v359_v18 }
  0x3c   : > { %861 = vmatpush.xpose.msk.msra.mxu0 %vm425_vm0, %v359_v18  ;;  %570 = vperm.xlu2 %973, %v556_v44   ;;  %v550_v18 = vld [vmem:[%s1393_s3 + $0x18] sm:$0xff] }
  0x3d   : > { %683 = vperm.xlu1 %972, %v679_v23  }
  0x3e   : > { %565 = vperm.xlu0 %971, %v555_v26  }
  0x3f   : > { %911 = vmatpush.xpose.msk.msra.mxu3 %vm425_vm0, %v358_v20  ;;  %910 = vmatpush.xpose.msk.msra.mxu2 %vm425_vm0, %v358_v20 }
  0x40   : > { %862 = vmatpush.xpose.msk.msra.mxu0 %vm425_vm0, %v358_v20  ;;  %v552_v20 = vld [vmem:[%s1393_s3 + $0x28] sm:$0xff] }
  0x43   : > { %913 = vmatpush.xpose.msk.msra.mxu3 %vm425_vm0, %v357_v22  ;;  %912 = vmatpush.xpose.msk.msra.mxu2 %vm425_vm0, %v357_v22 }
  0x44   : > { %863 = vmatpush.xpose.msk.msra.mxu0 %vm425_vm0, %v357_v22  ;;  %688 = vperm.xlu2 %973, %v680_v45   ;;  %v554_v22 = vld [vmem:[%s1393_s3 + $0x38] sm:$0xff] }
  0x45   : > { %731 = vperm.xlu1 %972, %v1245_v28  }
  0x46   : > { %726 = vperm.xlu0 %971, %v1258_v31  }
  0x47   : > { %915 = vmatpush.xpose.msk.msra.mxu3 %vm425_vm0, %v356_v24  ;;  %914 = vmatpush.xpose.msk.msra.mxu2 %vm425_vm0, %v356_v24 }
  0x48   : > { %864 = vmatpush.xpose.msk.msra.mxu0 %vm425_vm0, %v356_v24 }
  0x4b   : > { %917 = vmatpush.xpose.msk.msra.mxu3 %vm425_vm0, %v355_v27  ;;  %916 = vmatpush.xpose.msk.msra.mxu2 %vm425_vm0, %v355_v27 }
  0x4c   : > { %865 = vmatpush.xpose.msk.msra.mxu0 %vm425_vm0, %v355_v27  ;;  %974 = vset.pattern.permute.xlu2 %v1042_v30 }
  0x4d   : > { %765 = vperm.xlu1 %972, %v762_v33   ;;  %744 = vperm.xlu2 %974, %v1258_v31  }
  0x4e   : > { %975 = vset.pattern.permute.xlu0 %v1042_v30 }
  0x4f   : > { %919 = vmatpush.xpose.msk.msra.mxu3 %vm425_vm0, %v354_v29  ;;  %918 = vmatpush.xpose.msk.msra.mxu2 %vm425_vm0, %v354_v29 }
  0x50   : > { %866 = vmatpush.xpose.msk.msra.mxu0 %vm425_vm0, %v354_v29  ;;  %748 = vperm.xlu0 %975, %v1245_v28  }
  0x53   : > { %921 = vmatpush.xpose.msk.msra.mxu3 %vm425_vm0, %v353_v32  ;;  %920 = vmatpush.xpose.msk.msra.mxu2 %vm425_vm0, %v353_v32 }
  0x54   : > { %867 = vmatpush.xpose.msk.msra.mxu0 %vm425_vm0, %v353_v32 }
  0x56   : > { %873 = vmatmul.msk.f32.vlgmr.msra.gmra.mxu3 %vm425_vm0, %v374_v34  ;;  %871 = vmatmul.msk.f32.vlgmr.msra.gmra.mxu2 %vm425_vm0, %v372_v35 }
  0x57   : > { %868 = vmatmul.msk.f32.vlgmr.msra.gmra.mxu0 %vm425_vm0, %v369_v36 }
  0x58   : > { %976 = vset.pattern.permute.xlu0 %v1041_v4 }
  0x5e   : > { %874 = vmatmul.msk.f32.gmra.mxu3 %vm425_vm0, %v375_v38  ;;  %872 = vmatmul.msk.f32.gmra.mxu2 %vm425_vm0, %v373_v39 }
  0x5f   : > { %869 = vmatmul.msk.f32.gmra.mxu0 %vm425_vm0, %v370_v40 }
  0x66   : > { %875 = vmatmul.msk.f32.gmra.mxu3 %vm425_vm0, %v376_v42 }
  0x67   : > { %870 = vmatmul.msk.f32.gmra.mxu0 %vm425_vm0, %v371_v43 }
  0x76   : > { %v403_v53 = vpop.permute.xlu2 %402 }
  0x7e   : > { %v398_v3 = vpop.permute.xlu2 %397 }
  0x86   : > { %v601_v32 = vpop.permute.xlu2 %600 }
  0x87   : > { %v413_v49 = vpop.permute.xlu1 %412 }
  0x88   : > { %v423_v48 = vpop.permute.xlu0 %422 }
  0x8e   : > { %v586_v36 = vpop.permute.xlu2 %585 }
  0x8f   : > { %v408_v58 = vpop.permute.xlu1 %407 }
  0x90   : > { %v418_v54 = vpop.permute.xlu0 %417 }
  0x96   : > { %v571_v4 = vpop.permute.xlu2 %570 }
  0x97   : > { %v388_v10 = vpop.permute.xlu1 %387 }
  0x98   : > { %v393_v7 = vpop.permute.xlu0 %392 }
  0x9f   : > { %v591_v35 = vpop.permute.xlu1 %590 }
  0xa0   : > { %v596_v33 = vpop.permute.xlu0 %595 }
  0xa7   : > { %v576_v31 = vpop.permute.xlu1 %575 }
  0xa8   : > { %v581_v40 = vpop.permute.xlu0 %580 }
  0xd4   : > { %v515_v47 = vpop.f32.mrf.mxu0 }
  0xd5   : > { %v516_v11 = vadd.f32 %v515_v47, %v388_v10 }
  0xd7   : > { %v539_v14 = vmax.f32 %v516_v11, 0.0 }
  0xd9   : > { %v530_v46 = vpop.f32.mrf.mxu3  ;;  %v524_v50 = vpop.f32.mrf.mxu2 }
  0xda   : > { %v531_v60 = vadd.f32 %v530_v46, %v413_v49  ;;  %v525_v2 = vadd.f32 %v524_v50, %v403_v53  ;;  %v566_v50 = vpop.permute.xlu0 %565 }
  0xdc   : > { %v518_v52 = vpop.f32.mrf.mxu0  ;;  %v544_v1 = vmax.f32 %v531_v60, 0.0  ;;  %v542_v8 = vmax.f32 %v525_v2, 0.0 }
  0xdd   : > { %v519_v9 = vadd.f32 %v518_v52, %v393_v7 }
  0xdf   : > { %v540_v13 = vmax.f32 %v519_v9, 0.0 }
  0xe1   : > { %v533_v51 = vpop.f32.mrf.mxu3  ;;  %v527_v59 = vpop.f32.mrf.mxu2 }
  0xe2   : > { %v534_v56 = vadd.f32 %v533_v51, %v418_v54  ;;  %v528_v63 = vadd.f32 %v527_v59, %v408_v58  ;;  %v727_v58 = vpop.permute.xlu0 %726  ;;  %v689_v59 = vpop.permute.xlu2 %688 }
  0xe4   : > { %v545_v62 = vmax.f32 %v534_v56, 0.0  ;;  %v521_v0 = vpop.f32.mrf.mxu0  ;;  %v543_v5 = vmax.f32 %v528_v63, 0.0  ;;  %v678_v56 = vld [vmem:[%s1395_s5 + $0x8] sm:$0xff] }
  0xe5   : > { %v522_v6 = vadd.f32 %v521_v0, %v398_v3 }
  0xe7   : > { %v541_v12 = vmax.f32 %v522_v6, 0.0 }
  0xe9   : > { %v536_v55 = vpop.f32.mrf.mxu3 }
  0xea   : > { %v537_v57 = vadd.f32 %v536_v55, %v423_v48  ;;  %v677_v55 = vld [vmem:[%s1395_s5] sm:$0xff]  ;;  %v749_v2 = vpop.permute.xlu0 %748 }
  0xec   : > { %v546_v61 = vmax.f32 %v537_v57, 0.0  ;;  %v684_v57 = vpop.permute.xlu1 %683 }
  0xee   : > { %636 = vmatpush.msra.mxu1 %v546_v61 }
  0xf0   : > { %637 = vmatpush.msra.mxu1 %v545_v62 }
  0xf2   : > { %638 = vmatpush.msra.mxu1 %v544_v1  ;;  %v745_v1 = vpop.permute.xlu2 %744 }
  0xf4   : > { %639 = vmatpush.msra.mxu1 %v543_v5  ;;  %v732_v5 = vpop.permute.xlu1 %731 }
  0xf6   : > { %640 = vmatpush.msra.mxu1 %v542_v8 }
  0xf8   : > { %641 = vmatpush.msra.mxu1 %v541_v12 }
  0xfa   : > { %642 = vmatpush.msra.mxu1 %v540_v13 }
  0xfc   : > { %643 = vmatpush.msra.mxu1 %v539_v14 }
  0xfd   : > { %876 = vmatmul.msk.f32.vlgmr.msra.gmra.mxu1 %vm603_vm1, %v547_v15 }
 0x105   : > { %877 = vmatmul.msk.f32.gmra.mxu1 %vm603_vm1, %v548_v16 }
 0x10d   : > { %878 = vmatmul.msk.f32.gmra.mxu1 %vm603_vm1, %v549_v17 }
 0x115   : > { %879 = vmatmul.msk.f32.gmra.mxu1 %vm603_vm1, %v550_v18 }
 0x11d   : > { %880 = vmatmul.msk.f32.gmra.mxu1 %vm603_vm1, %v551_v19 }
 0x125   : > { %881 = vmatmul.msk.f32.gmra.mxu1 %vm603_vm1, %v552_v20 }
 0x12d   : > { %882 = vmatmul.msk.f32.gmra.mxu1 %vm603_vm1, %v553_v21 }
 0x135   : > { %883 = vmatmul.msk.f32.gmra.mxu1 %vm603_vm1, %v554_v22 }
 0x17a   : > { %v645_v23 = vpop.f32.mrf.mxu1 }
 0x17b   : > { %v646_v51 = vadd.f32 %v645_v23, %v566_v50 }
 0x17d   : > { %v669_v54 = vmax.f32 %v646_v51, 0.0 }
 0x182   : > { %v648_v24 = vpop.f32.mrf.mxu1 }
 0x183   : > { %v649_v48 = vadd.f32 %v648_v24, %v571_v4  ;;  %v766_v24 = vpop.permute.xlu1 %765 }
 0x185   : > { %v670_v53 = vmax.f32 %v649_v48, 0.0 }
 0x18a   : > { %v651_v25 = vpop.f32.mrf.mxu1 }
 0x18b   : > { %v652_v46 = vadd.f32 %v651_v25, %v576_v31 }
 0x18d   : > { %v671_v52 = vmax.f32 %v652_v46, 0.0 }
 0x192   : > { %v654_v26 = vpop.f32.mrf.mxu1 }
 0x193   : > { %v655_v45 = vadd.f32 %v654_v26, %v581_v40 }
 0x195   : > { %v672_v49 = vmax.f32 %v655_v45, 0.0 }
 0x19a   : > { %v657_v27 = vpop.f32.mrf.mxu1 }
 0x19b   : > { %v658_v43 = vadd.f32 %v657_v27, %v586_v36 }
 0x19d   : > { %v673_v47 = vmax.f32 %v658_v43, 0.0 }
 0x1a2   : > { %v660_v29 = vpop.f32.mrf.mxu1 }
 0x1a3   : > { %v661_v41 = vadd.f32 %v660_v29, %v591_v35 }
 0x1a5   : > { %v674_v28 = vmax.f32 %v661_v41, 0.0 }
 0x1aa   : > { %v663_v34 = vpop.f32.mrf.mxu1 }
 0x1ab   : > { %v664_v38 = vadd.f32 %v663_v34, %v596_v33 }
 0x1ad   : > { %v675_v44 = vmax.f32 %v664_v38, 0.0 }
 0x1b2   : > { %v666_v37 = vpop.f32.mrf.mxu1 }
 0x1b3   : > { %v667_v39 = vadd.f32 %v666_v37, %v601_v32 }
 0x1b5   : > { %v676_v42 = vmax.f32 %v667_v39, 0.0 }
 0x1b7   : > { %705 = vmatpush.msrb.mxu1 %v676_v42  ;;  %922 = vmatpush.msrb.mxu2 %v676_v42 }
 0x1b9   : > { %706 = vmatpush.msrb.mxu1 %v675_v44  ;;  %923 = vmatpush.msrb.mxu2 %v675_v44 }
 0x1bb   : > { %707 = vmatpush.msrb.mxu1 %v674_v28  ;;  %924 = vmatpush.msrb.mxu2 %v674_v28 }
 0x1bd   : > { %708 = vmatpush.msrb.mxu1 %v673_v47  ;;  %925 = vmatpush.msrb.mxu2 %v673_v47 }
 0x1bf   : > { %709 = vmatpush.msrb.mxu1 %v672_v49  ;;  %926 = vmatpush.msrb.mxu2 %v672_v49 }
 0x1c1   : > { %710 = vmatpush.msrb.mxu1 %v671_v52  ;;  %927 = vmatpush.msrb.mxu2 %v671_v52 }
 0x1c3   : > { %711 = vmatpush.msrb.mxu1 %v670_v53  ;;  %928 = vmatpush.msrb.mxu2 %v670_v53 }
 0x1c5   : > { %712 = vmatpush.msrb.mxu1 %v669_v54  ;;  %929 = vmatpush.msrb.mxu2 %v669_v54 }
 0x1c6   : > { %884 = vmatmul.msk.f32.vlgmr.msrb.gmra.mxu1 %vm603_vm1, %v677_v55  ;;  %885 = vmatmul.msk.f32.vlgmr.msrb.gmra.mxu2 %vm603_vm1, %v678_v56 }
 0x243   : > { %v714_v60 = vpop.f32.mrf.mxu1 }
 0x244   : > { %v715_v61 = vadd.f32 %v714_v60, %v684_v57 }
 0x246   : > { %v720_v63 = vmax.f32 %v715_v61, 0.0 }
 0x248   : > { %v734_v6 = vmul.f32 %v727_v58, %v720_v63  ;;  %v751_v7 = vmul.f32 %v745_v1, %v720_v63 }
 0x249   : > { %v717_v62 = vpop.f32.mrf.mxu2 }
 0x24a   : > { %v718_v0 = vadd.f32 %v717_v62, %v689_v59 }
 0x24c   : > { %v721_v3 = vmax.f32 %v718_v0, 0.0 }
 0x24e   : > { %v735_v8 = vmul.f32 %v732_v5, %v721_v3  ;;  %v752_v9 = vmul.f32 %v749_v2, %v721_v3 }
 0x250   : > { %v736_v10 = vadd.f32 %v735_v8, %v734_v6  ;;  %v753_v11 = vadd.f32 %v752_v9, %v751_v7 }
 0x252   : > { %v737_v12 = vrot.slane %v736_v10, 4  ;;  %v754_v13 = vrot.slane %v753_v11, 4 }
 0x254   : > { %v738_v14 = vadd.f32 %v737_v12, %v736_v10  ;;  %v755_v15 = vadd.f32 %v754_v13, %v753_v11 }
 0x256   : > { %v739_v16 = vrot.slane %v738_v14, 2  ;;  %v756_v17 = vrot.slane %v755_v15, 2 }
 0x258   : > { %v740_v18 = vadd.f32 %v739_v16, %v738_v14  ;;  %v757_v19 = vadd.f32 %v756_v17, %v755_v15 }
 0x25a   : > { %v741_v20 = vrot.slane %v740_v18, 1  ;;  %v758_v21 = vrot.slane %v757_v19, 1 }
 0x25c   : > { %v759_v22 = vadd.f32 %v758_v21, %v757_v19  ;;  %v742_v23 = vadd.f32 %v741_v20, %v740_v18 }
 0x25e   : > { %v761_v25 = vsel %vm760_vm2, %v742_v23, %v759_v22 }
 0x25f   : > { %v768_v26 = vadd.f32 %v766_v24, %v761_v25 }
 0x261   : > { %769 = vst [vmem:[%s338_s29] sm:$0x3] %v768_v26 }
 0x262   : > { %1004 = shalt.err (!%p1001_p3)
}
 0x263   : > { %930 = dma.vmem_to_hbm [thread:$0]  (%p1131_p5), %s784_s14, 32, %s786_s25, %s771_s13  }
 0x264 PF: > { %p936_p4 = scmp.ge.s32.totalorder %s1039_s12, 2  ;;  %s797_s22 = sand.u32 1, %s1027_s30  }
 0x265   : > { %s798_s28 = scalar_lea.sflag [#allocation3], %s797_s22 }
 0x266   : > { %p933_p7 = pnand %p936_p4, %p1135_p6 }
 0x268   : > { %p934_p8 = pneg %p933_p7 }
 0x26a   : > { %1022 = dma.done.wait (%p934_p8), %s798_s28, 32  }
 0x26b   : > { %1024 = vsyncadd (%p934_p8), %s798_s28, 4294967264  ;;  %p19_p9 = scmp.ge.s32.totalorder %s1118_s15, 4   ;;  %s1402_s30 = smov %s1031_s10 }
 0x26c   : > { %s1403_s10 = smov %s1035_s11  ;;  %s1404_s11 = smov %s1129_s18 }
 0x26d   : > { %s1405_s12 = smov %s1118_s15  ;;  %21 = sbr.rel (!%p19_p9) target bundleno = 3 (0x3), region = 91 }
 0x272   :  { %804 = vsyncpa [#allocation3], 1 }
 0x273   :  { %806 = vsyncpa [#allocation3 + $0x1], 1 }

</bundles_post_ra>
